<compile_context>
chip_gen: v5e
topology: v5e:2x2
jax: 0.10.0
libtpu: 0.0.40
codegen_flags: <defaults>
</compile_context>

<pallas_src>
import functools

import jax
import jax.numpy as jnp
from jax.experimental import pallas as pl
from jax.experimental.pallas import tpu as pltpu


def _round_up(x: int, m: int) -> int:
    return (x + m - 1) // m * m


def _gelu_tanh_f32(x):
    # PyTorch nn.functional.gelu(..., approximate='tanh'), computed in f32.
    c = jnp.float32(0.7978845608028654)  # sqrt(2/pi)
    x2 = x * x
    return (0.5 * x) * (1.0 + jnp.tanh(c * (x + 0.044715 * x2 * x)))


# --------------------------------------------------------------------------
# Kernel
# --------------------------------------------------------------------------
def decoder_mlp_kernel(x_ref, w1_ref, b1_ref, w2_ref, b2_ref, o_ref, acc_ref):
    # Grid: (token tiles, intermediate tiles); axis 1 is the reduction axis.
    j = pl.program_id(1)

    # fc1 partial: native-dtype operands, f32 accumulation on the MXU.
    h = jnp.dot(x_ref[...], w1_ref[...], preferred_element_type=jnp.float32)
    h = h + b1_ref[...].astype(jnp.float32)
    h = _gelu_tanh_f32(h)

    # fc2 partial: cast activations back to the weight dtype so the second
    # matmul also takes the fast MXU path; accumulate in f32.
    partial = jnp.dot(h.astype(w2_ref.dtype), w2_ref[...],
                      preferred_element_type=jnp.float32)

    @pl.when(j == 0)
    def _():
        acc_ref[...] = partial          # first step: write, no zero + RMW

    @pl.when(j != 0)
    def _():
        acc_ref[...] += partial

    @pl.when(j == pl.num_programs(1) - 1)
    def _():
        out = acc_ref[...] + b2_ref[...].astype(jnp.float32)
        o_ref[...] = out.astype(o_ref.dtype)


# --------------------------------------------------------------------------
# Generation-aware defaults
# --------------------------------------------------------------------------
@functools.lru_cache(maxsize=1)
def _generation_defaults():
    """(tm, ti, vmem_limit_bytes) derived from the device's VMEM capacity."""
    try:
        info = pltpu.get_tpu_info()
        vmem_cap = int(getattr(info, "vmem_capacity_bytes"))
    except Exception:
        vmem_cap = 64 * 1024 * 1024   # conservative fallback (safe everywhere)

    vmem_limit = int(vmem_cap * 0.85)
    if vmem_cap <= 96 * 1024 * 1024:
        # v7x-class: 64 MiB VMEM per TensorCore, high HBM BW -> smaller tiles.
        return 384, 256, vmem_limit
    # v5e / v6e: 128 MiB VMEM -> big token tiles for weight-stream reuse.
    return 512, 1024, vmem_limit


def _pick_ti(ti_target: int, I_pad: int) -> int:
    """Largest multiple of 128 <= ti_target that divides I_pad."""
    ti_eff = min(max(ti_target, 128), I_pad)
    ti_eff = max(128, (ti_eff // 128) * 128)
    while I_pad % ti_eff != 0:
        ti_eff -= 128
    return ti_eff


# --------------------------------------------------------------------------
# Weight padding (hoist out of the per-call path: do this once at model init)
# --------------------------------------------------------------------------
def pad_decoder_mlp_weights(w1, b1, w2, b2):
    """Pad fc1/fc2 params to 128-aligned shapes. Zero padding is exact."""
    H, I = w1.shape
    H_pad = _round_up(H, 128)
    I_pad = _round_up(I, 128)
    w1p = jnp.pad(w1, ((0, H_pad - H), (0, I_pad - I)))
    b1p = jnp.pad(b1, (0, I_pad - I)).reshape(1, I_pad)
    w2p = jnp.pad(w2, ((0, I_pad - I), (0, H_pad - H)))
    b2p = jnp.pad(b2, (0, H_pad - H)).reshape(1, H_pad)
    return w1p, b1p, w2p, b2p


# --------------------------------------------------------------------------
# Main entry point (padded weights; only x is padded per call)
# --------------------------------------------------------------------------
@functools.partial(jax.jit, static_argnames=("tm", "ti", "vmem_limit_bytes"))
def _decoder_mlp_padded(x, w1p, b1p, w2p, b2p, *, tm, ti, vmem_limit_bytes):
    M, H = x.shape
    H_pad, I_pad = w1p.shape

    x_bytes = jnp.dtype(x.dtype).itemsize
    w_bytes = jnp.dtype(w1p.dtype).itemsize

    # Sublane-aware minimum token tile (sub-32-bit dtypes pack along sublanes).
    min_rows = 8 if x_bytes >= 4 else (16 if x_bytes == 2 else 32)

    m_rounded = _round_up(M, min_rows)
    tm_eff = _round_up(min(tm, m_rounded), min_rows)
    # Split the token axis into >=2 tiles when M allows it without extra
    # padding, so both v7x TensorCores / megacore get work for decode-sized M.
    if m_rounded >= 2 * min_rows:
        tm_eff = min(tm_eff, _round_up(pl.cdiv(m_rounded, 2), min_rows))

    ti_eff = _pick_ti(ti, I_pad)

    # VMEM budget: double-buffered blocks + resident f32 acc + f32 h/GELU temps.
    def _est(tm_, ti_):
        blocks = (tm_ * H_pad * x_bytes       # x tile
                  + H_pad * ti_ * w_bytes     # w1 tile
                  + ti_ * H_pad * w_bytes     # w2 tile
                  + tm_ * H_pad * x_bytes     # out tile
                  + (ti_ + H_pad) * w_bytes)  # biases
        return 2 * blocks + tm_ * H_pad * 4 + 3 * tm_ * ti_ * 4

    budget = int(vmem_limit_bytes * 0.9)
    while _est(tm_eff, ti_eff) > budget and ti_eff > 128:
        ti_eff = _pick_ti(ti_eff // 2, I_pad)
    while _est(tm_eff, ti_eff) > budget and tm_eff > min_rows:
        tm_eff = max(min_rows, _round_up(tm_eff // 2, min_rows))

    M_pad = _round_up(M, tm_eff)
    n_m = M_pad // tm_eff
    n_i = I_pad // ti_eff

    # Per-call activation padding only (weights are pre-padded).
    # Zero padding is exact: padded x columns meet zero w1 rows, padded
    # intermediate lanes give gelu(0)=0 against zero w2 rows, padded output
    # lanes / token rows are sliced off below.
    xp = jnp.pad(x, ((0, M_pad - M), (0, H_pad - H)))

    out = pl.pallas_call(
        decoder_mlp_kernel,
        out_shape=jax.ShapeDtypeStruct((M_pad, H_pad), x.dtype),
        grid_spec=pltpu.PrefetchScalarGridSpec(
            num_scalar_prefetch=0,
            grid=(n_m, n_i),
            in_specs=[
                pl.BlockSpec((tm_eff, H_pad), lambda i, j: (i, 0)),   # x tile
                pl.BlockSpec((H_pad, ti_eff), lambda i, j: (0, j)),   # w1 tile
                pl.BlockSpec((1, ti_eff), lambda i, j: (0, j)),       # b1 tile
                pl.BlockSpec((ti_eff, H_pad), lambda i, j: (j, 0)),   # w2 tile
                pl.BlockSpec((1, H_pad), lambda i, j: (0, 0)),        # b2
            ],
            out_specs=pl.BlockSpec((tm_eff, H_pad), lambda i, j: (i, 0)),
            scratch_shapes=[pltpu.VMEM((tm_eff, H_pad), jnp.float32)],
        ),
        compiler_params=pltpu.CompilerParams(
            dimension_semantics=("parallel", "arbitrary"),
            vmem_limit_bytes=vmem_limit_bytes,
        ),
    )(xp, w1p, b1p, w2p, b2p)

    return out[:M, :H]


def decoder_mlp_padded(x, w1p, b1p, w2p, b2p, *, tm=None, ti=None,
                       vmem_limit_bytes=None):
    """Fused MLP on pre-padded weights (pad_decoder_mlp_weights)."""
    tm_d, ti_d, vmem_d = _generation_defaults()
    return _decoder_mlp_padded(
        x, w1p, b1p, w2p, b2p,
        tm=tm if tm is not None else tm_d,
        ti=ti if ti is not None else ti_d,
        vmem_limit_bytes=vmem_limit_bytes if vmem_limit_bytes is not None else vmem_d,
    )


def decoder_mlp(x, w1, b1, w2, b2, *, tm=None, ti=None, vmem_limit_bytes=None):
    """Convenience one-shot path: gelu_tanh(x @ w1 + b1) @ w2 + b2.

    x : [M, H] (tokens, hidden); w1: [H, I]; b1: [I]; w2: [I, H]; b2: [H].
    For production, pad weights once with pad_decoder_mlp_weights and call
    decoder_mlp_padded instead.
    """
    w1p, b1p, w2p, b2p = pad_decoder_mlp_weights(w1, b1, w2, b2)
    return decoder_mlp_padded(x, w1p, b1p, w2p, b2p, tm=tm, ti=ti,
                              vmem_limit_bytes=vmem_limit_bytes)


def reference_mlp(x, w1, b1, w2, b2):
    h = x @ w1 + b1
    h = _gelu_tanh_f32(h)
    return h @ w2 + b2


if __name__ == "__main__":
    # Small config consistent with the module: hidden_size=32, intermediate_size=128.
    batch, seq, hidden, intermediate = 2, 8, 32, 128

    key = jax.random.PRNGKey(0)
    kx, kw1, kb1, kw2, kb2 = jax.random.split(key, 5)

    # hidden_states in [batch, seq, hidden]; flatten to [tokens, hidden].
    hidden_states = jax.random.normal(kx, (batch, seq, hidden), dtype=jnp.float32)

    # nn.Linear weights ([out, in] in PyTorch) stored transposed as [in, out].
    w1 = jax.random.normal(kw1, (hidden, intermediate), dtype=jnp.float32) * 0.02
    b1 = jax.random.normal(kb1, (intermediate,), dtype=jnp.float32) * 0.02
    w2 = jax.random.normal(kw2, (intermediate, hidden), dtype=jnp.float32) * 0.02
    b2 = jax.random.normal(kb2, (hidden,), dtype=jnp.float32) * 0.02

    x2d = hidden_states.reshape(batch * seq, hidden)
    ref = reference_mlp(x2d, w1, b1, w2, b2).reshape(batch, seq, hidden)

    # ---- f32 path (convenience wrapper pads weights internally) ------------
    out = decoder_mlp(x2d, w1, b1, w2, b2)
    out = jax.block_until_ready(out).reshape(batch, seq, hidden)
    assert out.shape == (batch, seq, hidden)
    assert jnp.allclose(out, ref, atol=1e-5, rtol=1e-5), "f32 mismatch vs reference"

    # ---- bf16 mixed-precision path (hoisted weight padding) ----------------
    w1p, b1p, w2p, b2p = pad_decoder_mlp_weights(
        w1.astype(jnp.bfloat16), b1.astype(jnp.bfloat16),
        w2.astype(jnp.bfloat16), b2.astype(jnp.bfloat16))
    out_bf16 = decoder_mlp_padded(x2d.astype(jnp.bfloat16), w1p, b1p, w2p, b2p)
    out_bf16 = jax.block_until_ready(out_bf16).astype(jnp.float32)
    out_bf16 = out_bf16.reshape(batch, seq, hidden)
    assert jnp.allclose(out_bf16, ref, atol=2e-2, rtol=2e-2), "bf16 mismatch vs reference"

    print("KERNEL_OK")
</pallas_src>

<mosaic_0001>
module attributes {stable_mosaic.version = 11 : i64} {
  func.func @decoder_mlp_kernel(%arg0: i32, %arg1: i32, %arg2: memref<8x128xf32, #tpu.memory_space<vmem>>, %arg3: memref<128x128xf32, #tpu.memory_space<vmem>>, %arg4: memref<1x128xf32, #tpu.memory_space<vmem>>, %arg5: memref<128x128xf32, #tpu.memory_space<vmem>>, %arg6: memref<1x128xf32, #tpu.memory_space<vmem>>, %arg7: memref<8x128xf32, #tpu.memory_space<vmem>>, %arg8: memref<8x128xf32, #tpu.memory_space<vmem>>) attributes {dimension_semantics = [#tpu.dimension_semantics<parallel>, #tpu.dimension_semantics<arbitrary>], iteration_bounds = array<i64: 2, 1>, scalar_prefetch = 0 : i64, scratch_operands = 1 : i64, tpu.core_type = #tpu.core_type<tc>, window_params = [{transform_indices = @transform_0, window_bounds = array<i64: 8, 128>}, {transform_indices = @transform_1, window_bounds = array<i64: 128, 128>}, {transform_indices = @transform_2, window_bounds = array<i64: 1, 128>}, {transform_indices = @transform_3, window_bounds = array<i64: 128, 128>}, {pipeline_mode = #tpu.pipeline_mode<synchronous>, transform_indices = @transform_4, window_bounds = array<i64: 1, 128>}, {transform_indices = @transform_5, window_bounds = array<i64: 8, 128>}]} {
    %c0 = arith.constant 0 : index
    %c0_0 = arith.constant 0 : index
    %0 = vector.load %arg2[%c0, %c0_0] : memref<8x128xf32, #tpu.memory_space<vmem>>, vector<8x128xf32>
    %c0_1 = arith.constant 0 : index
    %c0_2 = arith.constant 0 : index
    %1 = vector.load %arg3[%c0_1, %c0_2] : memref<128x128xf32, #tpu.memory_space<vmem>>, vector<128x128xf32>
    %cst = arith.constant dense<0.000000e+00> : vector<8x128xf32>
    %2 = tpu.matmul %0, %1, %cst {dimension_numbers = #tpu.dot_dimension_numbers<[1], [0], [0], [1], [0, 0, 1, 1], [], []>} : vector<8x128xf32>, vector<128x128xf32>, vector<8x128xf32> -> vector<8x128xf32>
    %c0_3 = arith.constant 0 : index
    %c0_4 = arith.constant 0 : index
    %3 = vector.load %arg4[%c0_3, %c0_4] : memref<1x128xf32, #tpu.memory_space<vmem>>, vector<1x128xf32>
    %4 = vector.broadcast %3 : vector<1x128xf32> to vector<8x128xf32>
    %5 = arith.addf %2, %4 : vector<8x128xf32>
    %6 = arith.mulf %5, %5 : vector<8x128xf32>
    %cst_5 = arith.constant 5.000000e-01 : f32
    %7 = vector.broadcast %cst_5 : f32 to vector<8x128xf32>
    %8 = arith.mulf %7, %5 : vector<8x128xf32>
    %cst_6 = arith.constant 4.471500e-02 : f32
    %9 = vector.broadcast %cst_6 : f32 to vector<8x128xf32>
    %10 = arith.mulf %9, %6 : vector<8x128xf32>
    %11 = arith.mulf %10, %5 : vector<8x128xf32>
    %12 = arith.addf %5, %11 : vector<8x128xf32>
    %cst_7 = arith.constant 0.797884583 : f32
    %13 = vector.broadcast %cst_7 : f32 to vector<8x128xf32>
    %14 = arith.mulf %13, %12 : vector<8x128xf32>
    %15 = math.tanh %14 : vector<8x128xf32>
    %cst_8 = arith.constant 1.000000e+00 : f32
    %16 = vector.broadcast %cst_8 : f32 to vector<8x128xf32>
    %17 = arith.addf %16, %15 : vector<8x128xf32>
    %18 = arith.mulf %8, %17 : vector<8x128xf32>
    %c0_9 = arith.constant 0 : index
    %c0_10 = arith.constant 0 : index
    %19 = vector.load %arg5[%c0_9, %c0_10] : memref<128x128xf32, #tpu.memory_space<vmem>>, vector<128x128xf32>
    %cst_11 = arith.constant dense<0.000000e+00> : vector<8x128xf32>
    %20 = tpu.matmul %18, %19, %cst_11 {dimension_numbers = #tpu.dot_dimension_numbers<[1], [0], [0], [1], [0, 0, 1, 1], [], []>} : vector<8x128xf32>, vector<128x128xf32>, vector<8x128xf32> -> vector<8x128xf32>
    %c0_i32 = arith.constant 0 : i32
    %21 = arith.cmpi eq, %arg1, %c0_i32 : i32
    %22 = arith.extui %21 : i1 to i32
    %c0_i32_12 = arith.constant 0 : i32
    %23 = arith.cmpi ne, %22, %c0_i32_12 : i32
    scf.if %23 {
      %c0_17 = arith.constant 0 : index
      %c0_18 = arith.constant 0 : index
      %30 = vector.load %arg8[%c0_17, %c0_18] : memref<8x128xf32, #tpu.memory_space<vmem>>, vector<8x128xf32>
      tpu.vector_store %arg8[%c0_17, %c0_18], %20 {strides = array<i32>} : memref<8x128xf32, #tpu.memory_space<vmem>>, vector<8x128xf32>,
    } else {
    }
    %c0_i32_13 = arith.constant 0 : i32
    %24 = arith.cmpi ne, %arg1, %c0_i32_13 : i32
    %25 = arith.extui %24 : i1 to i32
    %c0_i32_14 = arith.constant 0 : i32
    %26 = arith.cmpi ne, %25, %c0_i32_14 : i32
    scf.if %26 {
      %c0_17 = arith.constant 0 : index
      %c0_18 = arith.constant 0 : index
      %30 = vector.load %arg8[%c0_17, %c0_18] : memref<8x128xf32, #tpu.memory_space<vmem>>, vector<8x128xf32>
      %31 = arith.addf %30, %20 : vector<8x128xf32>
      %c0_19 = arith.constant 0 : index
      %c0_20 = arith.constant 0 : index
      %32 = vector.load %arg8[%c0_19, %c0_20] : memref<8x128xf32, #tpu.memory_space<vmem>>, vector<8x128xf32>
      tpu.vector_store %arg8[%c0_19, %c0_20], %31 {strides = array<i32>} : memref<8x128xf32, #tpu.memory_space<vmem>>, vector<8x128xf32>,
    } else {
    }
    %c0_i32_15 = arith.constant 0 : i32
    %27 = arith.cmpi eq, %arg1, %c0_i32_15 : i32
    %28 = arith.extui %27 : i1 to i32
    %c0_i32_16 = arith.constant 0 : i32
    %29 = arith.cmpi ne, %28, %c0_i32_16 : i32
    scf.if %29 {
      %c0_17 = arith.constant 0 : index
      %c0_18 = arith.constant 0 : index
      %30 = vector.load %arg8[%c0_17, %c0_18] : memref<8x128xf32, #tpu.memory_space<vmem>>, vector<8x128xf32>
      %c0_19 = arith.constant 0 : index
      %c0_20 = arith.constant 0 : index
      %31 = vector.load %arg6[%c0_19, %c0_20] : memref<1x128xf32, #tpu.memory_space<vmem>>, vector<1x128xf32>
      %32 = vector.broadcast %31 : vector<1x128xf32> to vector<8x128xf32>
      %33 = arith.addf %30, %32 : vector<8x128xf32>
      %c0_21 = arith.constant 0 : index
      %c0_22 = arith.constant 0 : index
      %34 = vector.load %arg7[%c0_21, %c0_22] : memref<8x128xf32, #tpu.memory_space<vmem>>, vector<8x128xf32>
      tpu.vector_store %arg7[%c0_21, %c0_22], %33 {strides = array<i32>} : memref<8x128xf32, #tpu.memory_space<vmem>>, vector<8x128xf32>,
    } else {
    }
    return
  }
  func.func @transform_0(%arg0: i32, %arg1: i32) -> (i32, i32) {
    %c0_i32 = arith.constant 0 : i32
    %c0_i32_0 = arith.constant 0 : i32
    return %arg0, %c0_i32 : i32, i32
  }
  func.func @transform_1(%arg0: i32, %arg1: i32) -> (i32, i32) {
    %c0_i32 = arith.constant 0 : i32
    %c0_i32_0 = arith.constant 0 : i32
    return %c0_i32, %arg1 : i32, i32
  }
  func.func @transform_2(%arg0: i32, %arg1: i32) -> (i32, i32) {
    %c0_i32 = arith.constant 0 : i32
    %c0_i32_0 = arith.constant 0 : i32
    return %c0_i32, %arg1 : i32, i32
  }
  func.func @transform_3(%arg0: i32, %arg1: i32) -> (i32, i32) {
    %c0_i32 = arith.constant 0 : i32
    %c0_i32_0 = arith.constant 0 : i32
    return %arg1, %c0_i32 : i32, i32
  }
  func.func @transform_4(%arg0: i32, %arg1: i32) -> (i32, i32) {
    %c0_i32 = arith.constant 0 : i32
    %c0_i32_0 = arith.constant 0 : i32
    %c0_i32_1 = arith.constant 0 : i32
    return %c0_i32, %c0_i32_0 : i32, i32
  }
  func.func @transform_5(%arg0: i32, %arg1: i32) -> (i32, i32) {
    %c0_i32 = arith.constant 0 : i32
    %c0_i32_0 = arith.constant 0 : i32
    return %arg0, %c0_i32 : i32, i32
  }
}

</mosaic_0001>

<bundles_post_ra>
// kernel: _decoder_mlp_padded.1
= control target key start
LH: loop header
LB: loop body
LE: loop exit
PB: predicated region body
PF: predicated region fallthrough
CT: control target
= control target key end

     0   :  { %10 = vsyncpa [#allocation4], 0  ;;  %s936_s0 = inlined_call_operand.vmem [shape: f32[16,128], index: 0, kind: input, shape index: {}]   ;;  %s937_s1 = inlined_call_operand.hbm [shape: f32[128,128], index: 1, kind: input, shape index: {}]   ;;  %s938_s2 = inlined_call_operand.vmem [shape: f32[1,128], index: 2, kind: input, shape index: {}]   ;;  %s939_s3 = inlined_call_operand.hbm [shape: f32[128,128], index: 3, kind: input, shape index: {}]   ;;  %s940_s4 = inlined_call_operand.vmem [shape: f32[1,128], index: 4, kind: input, shape index: {}]   ;;  %s941_s5 = inlined_call_operand.hbm [shape: f32[16,128], index: 5, kind: output, shape index: {}]  }
   0x1   :  { %11 = vsyncpa [#allocation7], 0 }
   0x2   :  { %12 = vsyncpa [#allocation5], 0 }
   0x3   :  { %14 = vsyncpa [#allocation5 + $0x1], 0  ;;  %s805_s18 = smov 0   ;;  %s807_s19 = smov 0  }
   0x4   :  { %s809_s20 = smov 0   ;;  %s811_s21 = smov 0  }
   0x5   :  { %s813_s22 = smov 0   ;;  %s815_s23 = smov 0  }
   0x6 LB: > { %s525_s24 = sadd.s32 4294967295, %s769_s23   ;;  %s526_s25 = sadd.s32 4294967294, %s769_s23   ;;  %s769_s23 = sphi %s815_s23, %s20_s23   ;;  %s765_s22 = sphi %s813_s22, %s950_s22   ;;  %s761_s21 = sphi %s811_s21, %s949_s21   ;;  %s757_s20 = sphi %s809_s20, %s948_s20   ;;  %s753_s19 = sphi %s807_s19, %s947_s19   ;;  %s749_s18 = sphi %s805_s18, %s946_s18  }
   0x7   : > { %s32_s26 = sadd.s32 1, %s765_s22  ;;  %s164_s27 = sadd.s32 1, %s757_s20 }
   0x8   : > { %p34_p0 = scmp.ge.s32.totalorder %s32_s26, 2  ;;  %p174_p1 = scmp.ne.s32.totalorder %s757_s20, %s753_s19 }
   0x9   : > { %p175_p2 = scmp.eq.s32.totalorder %s525_s24, 1  ;;  %p180_p3 = scmp.ne.s32.totalorder %s753_s19, %s749_s18 }
   0xa   : > { %s952_s26 = smov (%p34_p0, %s32_s26), 0  ;;  %p181_p5 = scmp.eq.s32.totalorder %s526_s25, 1 }
   0xb   : > { %p845_p4 = por %p175_p2, %p174_p1  ;;  %s161_s29 = ssub.s32 %s765_s22, %s952_s26 }
   0xc   : > { %p527_p6 = scmp.ge.s32.totalorder %s769_s23, 1  ;;  %p162_p7 = scmp.eq.s32.totalorder %s161_s29, 0 }
   0xd   : > { %p852_p8 = por %p181_p5, %p180_p3  ;;  %p188_p9 = scmp.lt.s32.totalorder %s769_s23, 3 }
   0xe   : > { %s858_s6 = scalar_select %p162_p7, %s757_s20, %s164_s27  }
   0xf   : > { %p860_p10 = pnand %p527_p6, %p188_p9  ;;  %p864_p11 = scmp.eq.s32.totalorder %s525_s24, 0 }
  0x10   : > { %s201_s11 = sshll.u32 %s937_s1, 4  ;;  %s771_s12 = smov [#allocation3]   ;;  %s202_s11 = int_to_ptr.hbm [resolvable:$true] %s201_s11 }
  0x11   : > { %p551_p12 = pneg %p860_p10  ;;  %s203_s13 = sshll.u32 %s771_s12, 4  ;;  %s204_s13 = int_to_ptr.vmem [resolvable:$true] %s203_s13 }
  0x12   : > { %s224_s16 = sshll.u32 %s939_s3, 4  ;;  %s772_s17 = smov 128   ;;  %s225_s16 = int_to_ptr.hbm [resolvable:$true] %s224_s16 }
  0x13   : > { %p552_p13 = pnand %p864_p11, %p551_p12  ;;  %s773_s24 = smov 8  }
  0x14   : > { %s774_s25 = smov [#allocation6]   ;;  %252 = sbr.rel (%p860_p10) target bundleno = 340 (0x154), region = 40 }
  0x15   : > { %554 = dma.hbm_to_vmem [thread:$0]  (!%p552_p13), %s202_s11, 2048, %s204_s13, [#allocation4], %s772_s17, %s772_s17, %s773_s24  }
  0x16   : > { %s226_s27 = sshll.u32 %s774_s25, 4  ;;  %s227_s27 = int_to_ptr.vmem [resolvable:$true] %s226_s27 }
  0x17   : > { %557 = dma.hbm_to_vmem [thread:$0]  (!%p552_p13), %s225_s16, 2048, %s227_s27, [#allocation7], %s772_s17, %s772_s17, %s773_s24  }
  0x19   : > { %736 = dma.done.wait (%p864_p11), [#allocation4], 2048  }
  0x1a   : > { %738 = vsyncadd (%p864_p11), [#allocation4], 4294965248 }
  0x1b   : > { %740 = dma.done.wait (%p864_p11), [#allocation7], 2048  }
  0x1c   : > { %742 = vsyncadd (%p864_p11), [#allocation7], 4294965248  ;;  %v312_v0 = vld [vmem:[#allocation3 + $0x78] sm:$0xff]  ;;  %v311_v1 = vld [vmem:[#allocation3 + $0x70] sm:$0xff]  ;;  %p288_p0 = scmp.lt.s32.totalorder %s761_s21, 1  ;;  %s285_s13 = sand.u32 1, %s753_s19  }
  0x1d   : > { %317 = vmatpush.msra.mxu0 %v312_v0  ;;  %v310_v2 = vld [vmem:[#allocation3 + $0x68] sm:$0xff]  ;;  %v309_v3 = vld [vmem:[#allocation3 + $0x60] sm:$0xff]  ;;  %v361_v4 = vld [vmem:[#allocation6 + $0x78] sm:$0xff]  ;;  %s535_s14 = sshll.u32 %s285_s13, 3  ;;  %s538_s15 = sshll.u32 %s761_s21, 3 }
  0x1e   : > { %v308_v5 = vld [vmem:[#allocation3 + $0x58] sm:$0xff]  ;;  %362 = vmatpush.msra.mxu1 %v361_v4  ;;  %v360_v6 = vld [vmem:[#allocation6 + $0x70] sm:$0xff]  ;;  %v359_v7 = vld [vmem:[#allocation6 + $0x68] sm:$0xff]  ;;  %s289_s29 = scalar_select %p288_p0, %s761_s21, 1 }
  0x1f   : > { %318 = vmatpush.msra.mxu0 %v311_v1  ;;  %v307_v8 = vld [vmem:[#allocation3 + $0x50] sm:$0xff]  ;;  %v358_v9 = vld [vmem:[#allocation6 + $0x60] sm:$0xff]  ;;  %v306_v10 = vld [vmem:[#allocation3 + $0x48] sm:$0xff]  ;;  %s415_s24 = scalar_lea.hbm %s941_s5, %s538_s15  ;;  %s405_s9 = scalar_lea.sflag [#allocation5], %s285_s13 }
  0x20   : > { %363 = vmatpush.msra.mxu1 %v360_v6  ;;  %v305_v11 = vld [vmem:[#allocation3 + $0x40] sm:$0xff]  ;;  %v304_v12 = vld [vmem:[#allocation3 + $0x38] sm:$0xff]  ;;  %v303_v13 = vld [vmem:[#allocation3 + $0x30] sm:$0xff]  ;;  %s536_s7 = sshll.u32 %s289_s29, 3  ;;  %s287_s29 = scalar_lea.vmem [#allocation8], %s535_s14 }
  0x21   : > { %319 = vmatpush.msra.mxu0 %v310_v2  ;;  %v302_v14 = vld [vmem:[#allocation3 + $0x28] sm:$0xff]  ;;  %v301_v15 = vld [vmem:[#allocation3 + $0x20] sm:$0xff]  ;;  %v300_v16 = vld [vmem:[#allocation3 + $0x18] sm:$0xff]  ;;  %s291_s10 = scalar_lea.vmem %s936_s0, %s536_s7  ;;  %s417_s7 = sshll.u32 %s287_s29, 4  ;;  %s418_s7 = int_to_ptr.vmem [resolvable:$true] %s417_s7 }
  0x22   : > { %364 = vmatpush.msra.mxu1 %v359_v7  ;;  %v299_v17 = vld [vmem:[#allocation3 + $0x10] sm:$0xff]  ;;  %v298_v18 = vld [vmem:[#allocation3 + $0x8] sm:$0xff]  ;;  %v297_v19 = vld [vmem:[#allocation3] sm:$0xff]  ;;  %s419_s8 = sshll.u32 %s415_s24, 4  ;;  %s703_s15 = scalar_lea.hbm %s941_s5, 16  ;;  %s420_s8 = int_to_ptr.hbm [resolvable:$true] %s419_s8 }
  0x23   : > { %320 = vmatpush.msra.mxu0 %v309_v3  ;;  %v296_v20 = vld [vmem:[%s291_s10] sm:$0xff]  ;;  %v357_v21 = vld [vmem:[#allocation6 + $0x58] sm:$0xff]  ;;  %v356_v22 = vld [vmem:[#allocation6 + $0x50] sm:$0xff]  ;;  %s697_s10 = sshra.s32 %s420_s8, 4  ;;  %s698_s10 = int_to_ptr.hbm [resolvable:$true] %s697_s10 }
  0x24   : > { %365 = vmatpush.msra.mxu1 %v358_v9  ;;  %v355_v23 = vld [vmem:[#allocation6 + $0x48] sm:$0xff]  ;;  %v354_v24 = vld [vmem:[#allocation6 + $0x40] sm:$0xff]  ;;  %v353_v25 = vld [vmem:[#allocation6 + $0x38] sm:$0xff]  ;;  %s699_s21 = scalar_lea.hbm %s698_s10, 8  ;;  %p704_p5 = scmp.lt.s32.totalorder %s698_s10, %s941_s5 }
  0x25   : > { %321 = vmatpush.msra.mxu0 %v308_v5  ;;  %v352_v26 = vld [vmem:[#allocation6 + $0x30] sm:$0xff]  ;;  %v351_v27 = vld [vmem:[#allocation6 + $0x28] sm:$0xff]  ;;  %v350_v28 = vld [vmem:[#allocation6 + $0x20] sm:$0xff]  ;;  %p700_p1 = scmp.ne.s32.totalorder %s698_s10, %s699_s21  ;;  %p705_p6 = scmp.lt.s32.totalorder %s703_s15, %s699_s21 }
  0x26   : > { %366 = vmatpush.msra.mxu1 %v357_v21  ;;  %v349_v29 = vld [vmem:[#allocation6 + $0x18] sm:$0xff]  ;;  %v348_v30 = vld [vmem:[#allocation6 + $0x10] sm:$0xff]  ;;  %v347_v31 = vld [vmem:[#allocation6 + $0x8] sm:$0xff] }
  0x27   : > { %322 = vmatpush.msra.mxu0 %v307_v8  ;;  %v346_v32 = vld [vmem:[#allocation6] sm:$0xff]  ;;  %p701_p2 = pnand %p700_p1, %p845_p4  ;;  %p706_p7 = por %p705_p6, %p704_p5 }
  0x28   : > { %367 = vmatpush.msra.mxu1 %v356_v22  ;;  %v619_v33 = vld [vmem:[%s938_s2] ss:$0 sm:$0xff] }
  0x29   : > { %323 = vmatpush.msra.mxu0 %v306_v10  ;;  %v620_v45 = vld [vmem:[%s940_s4] ss:$0 sm:$0xff]  ;;  %p702_p3 = pneg %p701_p2 }
  0x2a   : > { %368 = vmatpush.msra.mxu1 %v355_v23 }
  0x2b   : > { %324 = vmatpush.msra.mxu0 %v305_v11  ;;  %p707_p9 = pnand %p706_p7, %p702_p3 }
  0x2c   : > { %369 = vmatpush.msra.mxu1 %v354_v24 }
  0x2d   : > { %325 = vmatpush.msra.mxu0 %v304_v12 }
  0x2e   : > { %370 = vmatpush.msra.mxu1 %v353_v25 }
  0x2f   : > { %326 = vmatpush.msra.mxu0 %v303_v13 }
  0x30   : > { %371 = vmatpush.msra.mxu1 %v352_v26 }
  0x31   : > { %327 = vmatpush.msra.mxu0 %v302_v14 }
  0x32   : > { %372 = vmatpush.msra.mxu1 %v351_v27 }
  0x33   : > { %328 = vmatpush.msra.mxu0 %v301_v15 }
  0x34   : > { %373 = vmatpush.msra.mxu1 %v350_v28 }
  0x35   : > { %329 = vmatpush.msra.mxu0 %v300_v16 }
  0x36   : > { %374 = vmatpush.msra.mxu1 %v349_v29 }
  0x37   : > { %330 = vmatpush.msra.mxu0 %v299_v17 }
  0x38   : > { %375 = vmatpush.msra.mxu1 %v348_v30 }
  0x39   : > { %331 = vmatpush.msra.mxu0 %v298_v18 }
  0x3a   : > { %376 = vmatpush.msra.mxu1 %v347_v31 }
  0x3b   : > { %332 = vmatpush.msra.mxu0 %v297_v19 }
  0x3c   : > { %333 = vmatmul.f32.vlgmr.msra.gmra.mxu0 %v296_v20  ;;  %377 = vmatpush.msra.mxu1 %v346_v32 }
  0xb9   : > { %v334_v34 = vpop.f32.mrf.mxu0 }
  0xba   : > { %v335_v35 = vadd.f32 %v619_v33, %v334_v34 }
  0xbc   : > { %v337_v36 = vmul.f32 %v335_v35, %v335_v35  ;;  %v338_v42 = vmul.f32 0.5, %v335_v35 }
  0xbe   : > { %v339_v37 = vmul.f32 0.044715, %v337_v36 }
  0xc0   : > { %v340_v38 = vmul.f32 %v339_v37, %v335_v35 }
  0xc2   : > { %v341_v39 = vadd.f32 %v340_v38, %v335_v35 }
  0xc4   : > { %v342_v40 = vmul.f32 0.7978846, %v341_v39 }
  0xc6   : > { %621 = vtanh.f32 %v342_v40 }
  0xcc   : > { %v622_v41 = vpop.eup %621 }
  0xcd   : > { %v344_v43 = vadd.f32 1.0, %v622_v41 }
  0xcf   : > { %v345_v44 = vmul.f32 %v344_v43, %v338_v42 }
  0xd1   : > { %378 = vmatmul.f32.vlgmr.msra.gmra.mxu1 %v345_v44 }
 0x14e   : > { %v379_v46 = vpop.f32.mrf.mxu1 }
 0x14f   : > { %v402_v47 = vadd.f32 %v620_v45, %v379_v46 }
 0x151   : > { %403 = vst [vmem:[%s287_s29] sm:$0xff] %v402_v47 }
 0x152   : > { %710 = shalt.err (!%p707_p9)
}
 0x153   : > { %549 = dma.vmem_to_hbm [thread:$0]  (%p845_p4), %s418_s7, 128, %s420_s8, %s405_s9  }
 0x154 PF: > { %p566_p10 = scmp.ge.s32.totalorder %s769_s23, 2  ;;  %s431_s13 = sand.u32 1, %s749_s18  }
 0x155   : > { %s432_s17 = scalar_lea.sflag [#allocation5], %s431_s13 }
 0x156   : > { %p559_p11 = pnand %p566_p10, %p852_p8 }
 0x158   : > { %p560_p12 = pneg %p559_p11 }
 0x15a   : > { %744 = dma.done.wait (%p560_p12), %s432_s17, 128  }
 0x15b   : > { %746 = vsyncadd (%p560_p12), %s432_s17, 4294967168  ;;  %s20_s23 = sadd.s32 1, %s769_s23   ;;  %s946_s18 = smov %s753_s19 }
 0x15c   : > { %p17_p13 = scmp.ge.s32.totalorder %s20_s23, 4   ;;  %s947_s19 = smov %s757_s20 }
 0x15d   : > { %s948_s20 = smov %s858_s6  ;;  %s949_s21 = smov %s765_s22 }
 0x15e   : > { %s950_s22 = smov %s952_s26  ;;  %19 = sbr.rel (!%p17_p13) target bundleno = 6 (0x6), region = 101 }
 0x163   :  { %438 = vsyncpa [#allocation4], 1 }
 0x164   :  { %440 = vsyncpa [#allocation4 + $0x1], 1 }
 0x165   :  { %441 = vsyncpa [#allocation7], 1 }
 0x166   :  { %442 = vsyncpa [#allocation5], 1 }
 0x167   :  { %444 = vsyncpa [#allocation5 + $0x1], 1 }

</bundles_post_ra>
